<compile_context>
chip_gen: v5e
topology: v5e:2x2
jax: 0.10.0
libtpu: 0.0.40
codegen_flags: <defaults>
</compile_context>

<pallas_src>
import functools

import jax
import jax.numpy as jnp
from jax.experimental import pallas as pl
from jax.experimental.pallas import tpu as pltpu

# ---- module hyper-parameters (config) ---------------------------------------
N_QUBITS   = 4          # config["n_qubits"]  (== obs_dim for angle embedding)
N_LAYERS_Q = 2          # config["n_layers_q"]
REUSE      = 2          # config["reuse_repetitions"]
HIDDEN     = 32         # config["net_arch"]["pi"] = [32]
ACT_DIM    = 4          # action dimension
SCALE_INIT = 2.0        # config["output_scale_init"], use_output_scaling=True
BATCH      = 2
BM_MAX     = 512        # max batch rows per grid step (KBs of VMEM everywhere)


def _round_up(x, m):
    return ((x + m - 1) // m) * m


# ---- Pallas kernel: the whole forward hot path -------------------------------
def hybrid_qnet_kernel(x_ref, theta_ref, w1f_ref, b1_ref, w2st_ref, b2s_ref,
                       out_ref):
    # Quantum layer surrogate (non-entangling "basic" circuit):
    #   AngleEmbedding RY(x_i) followed by per-layer RY(theta_{l,i}),
    #   measure <Z_i>  ==>  <Z_i> = cos(x_i + sum_l theta_{l,i}).
    # TODO(synk): build_basic_qlayer is an external PennyLane TorchLayer; an
    # entangling circuit (CNOT ring) has no closed form / clean Pallas
    # equivalent, so this reproduces only the non-entangling circuit.
    theta = theta_ref[...]                                # (1, NQ)     hoisted
    w1f   = w1f_ref[...]                                  # (NQ, HIDDEN)
    b1    = b1_ref[...]                                   # (1, HIDDEN)
    w2st  = w2st_ref[...]                                 # (ACT_DIM, HIDDEN)
    b2s   = b2s_ref[...]                                  # (1, ACT_DIM)

    q = jnp.cos(x_ref[...] + theta)                       # (BM, NQ)  EUP cos

    # Linear(NQ, HIDDEN) + ReLU as K-unrolled VPU broadcast-FMAs (no MXU).
    h1 = q[:, 0:1] * w1f[0:1, :]                          # (BM, HIDDEN)
    for k in range(1, N_QUBITS):
        h1 = h1 + q[:, k:k+1] * w1f[k:k+1, :]
    h1 = jnp.maximum(h1 + b1, 0.0)

    # Linear(HIDDEN, ACT_DIM) (scale pre-folded) as N-unrolled lane reductions.
    cols = []
    for n in range(ACT_DIM):
        cols.append(jnp.sum(h1 * w2st[n:n+1, :], axis=1, keepdims=True))
    out_ref[...] = (jnp.concatenate(cols, axis=1) + b2s).astype(out_ref.dtype)


# ---- wrapper: parameter folding + batched, batch-parallel pallas_call ---------
@functools.partial(jax.jit, static_argnames=())
def hybrid_agent_forward(x, params):
    wq, w1, b1, w2, b2, scale = params

    # Fold once per call on the host/XLA side (trivial cost, removes in-kernel
    # reduce / concat / multiply and two input DMAs).
    theta = jnp.sum(wq, axis=0, keepdims=True)                         # (1, NQ)
    w1f   = jnp.sum(w1.reshape(REUSE, N_QUBITS, HIDDEN), axis=0)       # (NQ, H)
    w2st  = (w2 * scale).T                                             # (A, H)
    b2s   = b2 * scale                                                 # (1, A)

    B = x.shape[0]
    bm = min(BM_MAX, _round_up(max(B, 1), 8))       # batch rows per grid step
    b_pad = _round_up(B, bm)
    if b_pad != B:
        x = jnp.pad(x, ((0, b_pad - B), (0, 0)))

    param_spec = lambda shape: pl.BlockSpec(shape, lambda i: (0, 0))

    out = pl.pallas_call(
        hybrid_qnet_kernel,
        out_shape=jax.ShapeDtypeStruct((b_pad, ACT_DIM), jnp.float32),
        grid=(b_pad // bm,),
        in_specs=[
            pl.BlockSpec((bm, N_QUBITS), lambda i: (i, 0)),   # x (batch-tiled)
            param_spec((1, N_QUBITS)),                        # theta
            param_spec((N_QUBITS, HIDDEN)),                   # w1 folded
            param_spec((1, HIDDEN)),                          # b1
            param_spec((ACT_DIM, HIDDEN)),                    # w2.T * scale
            param_spec((1, ACT_DIM)),                         # b2 * scale
        ],
        out_specs=pl.BlockSpec((bm, ACT_DIM), lambda i: (i, 0)),
        compiler_params=pltpu.CompilerParams(
            dimension_semantics=("parallel",)),               # v7x: both TCs
    )(x, theta, w1f, b1, w2st, b2s)
    return out[:B]


# ---- pure-JAX reference (original, unfolded semantics) ------------------------
def reference_forward(x, params):
    wq, w1, b1, w2, b2, scale = params
    q = jnp.cos(x + jnp.sum(wq, axis=0, keepdims=True))
    h = jnp.tile(q, (1, REUSE))
    h1 = jnp.maximum(h @ w1 + b1, 0.0)
    logits = h1 @ w2 + b2
    return logits * scale


# ---- deterministic parameter construction ------------------------------------
def make_params(key):
    k_wq, k_w1, k_b1, k_w2, k_b2 = jax.random.split(key, 5)
    prev_dim = N_QUBITS * REUSE
    wq = 0.1 * jax.random.normal(k_wq, (N_LAYERS_Q, N_QUBITS), jnp.float32)
    # nn.Linear weights stored pre-transposed as (in_features, out_features)
    w1 = jax.random.normal(k_w1, (prev_dim, HIDDEN), jnp.float32) / jnp.sqrt(prev_dim)
    b1 = 0.01 * jax.random.normal(k_b1, (1, HIDDEN), jnp.float32)
    w2 = jax.random.normal(k_w2, (HIDDEN, ACT_DIM), jnp.float32) / jnp.sqrt(HIDDEN)
    b2 = 0.01 * jax.random.normal(k_b2, (1, ACT_DIM), jnp.float32)
    scale = jnp.full((1, ACT_DIM), SCALE_INIT, jnp.float32)
    return (wq, w1, b1, w2, b2, scale)


if __name__ == "__main__":
    key = jax.random.PRNGKey(0)
    k_x, k_p, k_big = jax.random.split(key, 3)
    params = make_params(k_p)

    # Small demo batch (matches the module's typical RL rollout usage).
    x = jax.random.normal(k_x, (BATCH, N_QUBITS), jnp.float32)
    out = jax.block_until_ready(hybrid_agent_forward(x, params))
    ref = reference_forward(x, params)
    assert out.shape == (BATCH, ACT_DIM)
    assert jnp.allclose(out, ref, atol=1e-4, rtol=1e-4), (out, ref)

    # Larger batch exercises the padded, multi-step parallel batch grid.
    xb = jax.random.normal(k_big, (1000, N_QUBITS), jnp.float32)
    outb = jax.block_until_ready(hybrid_agent_forward(xb, params))
    refb = reference_forward(xb, params)
    assert outb.shape == (1000, ACT_DIM)
    assert jnp.allclose(outb, refb, atol=1e-4, rtol=1e-4)

    print("KERNEL_OK")
</pallas_src>

<mosaic_0001>
module attributes {stable_mosaic.version = 11 : i64} {
  func.func @hybrid_qnet_kernel(%arg0: i32, %arg1: memref<8x4xf32, #tpu.memory_space<vmem>>, %arg2: memref<1x4xf32, #tpu.memory_space<vmem>>, %arg3: memref<4x32xf32, #tpu.memory_space<vmem>>, %arg4: memref<1x32xf32, #tpu.memory_space<vmem>>, %arg5: memref<4x32xf32, #tpu.memory_space<vmem>>, %arg6: memref<1x4xf32, #tpu.memory_space<vmem>>, %arg7: memref<8x4xf32, #tpu.memory_space<vmem>>) attributes {dimension_semantics = [#tpu.dimension_semantics<parallel>], iteration_bounds = array<i64: 1>, scalar_prefetch = 0 : i64, scratch_operands = 0 : i64, tpu.core_type = #tpu.core_type<tc>, window_params = [{transform_indices = @transform_0, window_bounds = array<i64: 8, 4>}, {pipeline_mode = #tpu.pipeline_mode<synchronous>, transform_indices = @transform_1, window_bounds = array<i64: 1, 4>}, {pipeline_mode = #tpu.pipeline_mode<synchronous>, transform_indices = @transform_2, window_bounds = array<i64: 4, 32>}, {pipeline_mode = #tpu.pipeline_mode<synchronous>, transform_indices = @transform_3, window_bounds = array<i64: 1, 32>}, {pipeline_mode = #tpu.pipeline_mode<synchronous>, transform_indices = @transform_4, window_bounds = array<i64: 4, 32>}, {pipeline_mode = #tpu.pipeline_mode<synchronous>, transform_indices = @transform_5, window_bounds = array<i64: 1, 4>}, {transform_indices = @transform_6, window_bounds = array<i64: 8, 4>}]} {
    %c0 = arith.constant 0 : index
    %c0_0 = arith.constant 0 : index
    %0 = vector.load %arg2[%c0, %c0_0] : memref<1x4xf32, #tpu.memory_space<vmem>>, vector<1x4xf32>
    %c0_1 = arith.constant 0 : index
    %c0_2 = arith.constant 0 : index
    %1 = vector.load %arg3[%c0_1, %c0_2] : memref<4x32xf32, #tpu.memory_space<vmem>>, vector<4x32xf32>
    %c0_3 = arith.constant 0 : index
    %c0_4 = arith.constant 0 : index
    %2 = vector.load %arg4[%c0_3, %c0_4] : memref<1x32xf32, #tpu.memory_space<vmem>>, vector<1x32xf32>
    %c0_5 = arith.constant 0 : index
    %c0_6 = arith.constant 0 : index
    %3 = vector.load %arg5[%c0_5, %c0_6] : memref<4x32xf32, #tpu.memory_space<vmem>>, vector<4x32xf32>
    %c0_7 = arith.constant 0 : index
    %c0_8 = arith.constant 0 : index
    %4 = vector.load %arg6[%c0_7, %c0_8] : memref<1x4xf32, #tpu.memory_space<vmem>>, vector<1x4xf32>
    %c0_9 = arith.constant 0 : index
    %c0_10 = arith.constant 0 : index
    %5 = vector.load %arg1[%c0_9, %c0_10] : memref<8x4xf32, #tpu.memory_space<vmem>>, vector<8x4xf32>
    %6 = vector.broadcast %0 : vector<1x4xf32> to vector<8x4xf32>
    %7 = arith.addf %5, %6 : vector<8x4xf32>
    %8 = math.cos %7 : vector<8x4xf32>
    %9 = vector.extract_strided_slice %8 {offsets = [0, 0], sizes = [8, 1], strides = [1, 1]} : vector<8x4xf32> to vector<8x1xf32>
    %10 = vector.extract_strided_slice %1 {offsets = [0, 0], sizes = [1, 32], strides = [1, 1]} : vector<4x32xf32> to vector<1x32xf32>
    %11 = vector.broadcast %9 : vector<8x1xf32> to vector<8x32xf32>
    %12 = vector.broadcast %10 : vector<1x32xf32> to vector<8x32xf32>
    %13 = arith.mulf %11, %12 : vector<8x32xf32>
    %14 = vector.extract_strided_slice %8 {offsets = [0, 1], sizes = [8, 1], strides = [1, 1]} : vector<8x4xf32> to vector<8x1xf32>
    %15 = vector.extract_strided_slice %1 {offsets = [1, 0], sizes = [1, 32], strides = [1, 1]} : vector<4x32xf32> to vector<1x32xf32>
    %16 = vector.broadcast %14 : vector<8x1xf32> to vector<8x32xf32>
    %17 = vector.broadcast %15 : vector<1x32xf32> to vector<8x32xf32>
    %18 = arith.mulf %16, %17 : vector<8x32xf32>
    %19 = arith.addf %13, %18 : vector<8x32xf32>
    %20 = vector.extract_strided_slice %8 {offsets = [0, 2], sizes = [8, 1], strides = [1, 1]} : vector<8x4xf32> to vector<8x1xf32>
    %21 = vector.extract_strided_slice %1 {offsets = [2, 0], sizes = [1, 32], strides = [1, 1]} : vector<4x32xf32> to vector<1x32xf32>
    %22 = vector.broadcast %20 : vector<8x1xf32> to vector<8x32xf32>
    %23 = vector.broadcast %21 : vector<1x32xf32> to vector<8x32xf32>
    %24 = arith.mulf %22, %23 : vector<8x32xf32>
    %25 = arith.addf %19, %24 : vector<8x32xf32>
    %26 = vector.extract_strided_slice %8 {offsets = [0, 3], sizes = [8, 1], strides = [1, 1]} : vector<8x4xf32> to vector<8x1xf32>
    %27 = vector.extract_strided_slice %1 {offsets = [3, 0], sizes = [1, 32], strides = [1, 1]} : vector<4x32xf32> to vector<1x32xf32>
    %28 = vector.broadcast %26 : vector<8x1xf32> to vector<8x32xf32>
    %29 = vector.broadcast %27 : vector<1x32xf32> to vector<8x32xf32>
    %30 = arith.mulf %28, %29 : vector<8x32xf32>
    %31 = arith.addf %25, %30 : vector<8x32xf32>
    %32 = vector.broadcast %2 : vector<1x32xf32> to vector<8x32xf32>
    %33 = arith.addf %31, %32 : vector<8x32xf32>
    %cst = arith.constant 0.000000e+00 : f32
    %34 = vector.broadcast %cst : f32 to vector<8x32xf32>
    %35 = arith.maximumf %33, %34 : vector<8x32xf32>
    %36 = vector.extract_strided_slice %3 {offsets = [0, 0], sizes = [1, 32], strides = [1, 1]} : vector<4x32xf32> to vector<1x32xf32>
    %37 = vector.broadcast %36 : vector<1x32xf32> to vector<8x32xf32>
    %38 = arith.mulf %35, %37 : vector<8x32xf32>
    %cst_11 = arith.constant dense<0.000000e+00> : vector<8xf32>
    %39 = vector.multi_reduction <add>, %38, %cst_11 [1] : vector<8x32xf32> to vector<8xf32>
    %40 = vector.shape_cast %39 : vector<8xf32> to vector<8x1xf32>
    %41 = vector.extract_strided_slice %3 {offsets = [1, 0], sizes = [1, 32], strides = [1, 1]} : vector<4x32xf32> to vector<1x32xf32>
    %42 = vector.broadcast %41 : vector<1x32xf32> to vector<8x32xf32>
    %43 = arith.mulf %35, %42 : vector<8x32xf32>
    %cst_12 = arith.constant dense<0.000000e+00> : vector<8xf32>
    %44 = vector.multi_reduction <add>, %43, %cst_12 [1] : vector<8x32xf32> to vector<8xf32>
    %45 = vector.shape_cast %44 : vector<8xf32> to vector<8x1xf32>
    %46 = vector.extract_strided_slice %3 {offsets = [2, 0], sizes = [1, 32], strides = [1, 1]} : vector<4x32xf32> to vector<1x32xf32>
    %47 = vector.broadcast %46 : vector<1x32xf32> to vector<8x32xf32>
    %48 = arith.mulf %35, %47 : vector<8x32xf32>
    %cst_13 = arith.constant dense<0.000000e+00> : vector<8xf32>
    %49 = vector.multi_reduction <add>, %48, %cst_13 [1] : vector<8x32xf32> to vector<8xf32>
    %50 = vector.shape_cast %49 : vector<8xf32> to vector<8x1xf32>
    %51 = vector.extract_strided_slice %3 {offsets = [3, 0], sizes = [1, 32], strides = [1, 1]} : vector<4x32xf32> to vector<1x32xf32>
    %52 = vector.broadcast %51 : vector<1x32xf32> to vector<8x32xf32>
    %53 = arith.mulf %35, %52 : vector<8x32xf32>
    %cst_14 = arith.constant dense<0.000000e+00> : vector<8xf32>
    %54 = vector.multi_reduction <add>, %53, %cst_14 [1] : vector<8x32xf32> to vector<8xf32>
    %55 = vector.shape_cast %54 : vector<8xf32> to vector<8x1xf32>
    %56 = tpu.concatenate %40, %45, %50, %55 in 1 : vector<8x1xf32>, vector<8x1xf32>, vector<8x1xf32>, vector<8x1xf32> -> vector<8x4xf32>
    %57 = vector.broadcast %4 : vector<1x4xf32> to vector<8x4xf32>
    %58 = arith.addf %56, %57 : vector<8x4xf32>
    %c0_15 = arith.constant 0 : index
    %c0_16 = arith.constant 0 : index
    %59 = vector.load %arg7[%c0_15, %c0_16] : memref<8x4xf32, #tpu.memory_space<vmem>>, vector<8x4xf32>
    tpu.vector_store %arg7[%c0_15, %c0_16], %58 {strides = array<i32>} : memref<8x4xf32, #tpu.memory_space<vmem>>, vector<8x4xf32>,
    return
  }
  func.func @transform_0(%arg0: i32) -> (i32, i32) {
    %c0_i32 = arith.constant 0 : i32
    %c0_i32_0 = arith.constant 0 : i32
    return %arg0, %c0_i32 : i32, i32
  }
  func.func @transform_1(%arg0: i32) -> (i32, i32) {
    %c0_i32 = arith.constant 0 : i32
    %c0_i32_0 = arith.constant 0 : i32
    %c0_i32_1 = arith.constant 0 : i32
    return %c0_i32, %c0_i32_0 : i32, i32
  }
  func.func @transform_2(%arg0: i32) -> (i32, i32) {
    %c0_i32 = arith.constant 0 : i32
    %c0_i32_0 = arith.constant 0 : i32
    %c0_i32_1 = arith.constant 0 : i32
    return %c0_i32, %c0_i32_0 : i32, i32
  }
  func.func @transform_3(%arg0: i32) -> (i32, i32) {
    %c0_i32 = arith.constant 0 : i32
    %c0_i32_0 = arith.constant 0 : i32
    %c0_i32_1 = arith.constant 0 : i32
    return %c0_i32, %c0_i32_0 : i32, i32
  }
  func.func @transform_4(%arg0: i32) -> (i32, i32) {
    %c0_i32 = arith.constant 0 : i32
    %c0_i32_0 = arith.constant 0 : i32
    %c0_i32_1 = arith.constant 0 : i32
    return %c0_i32, %c0_i32_0 : i32, i32
  }
  func.func @transform_5(%arg0: i32) -> (i32, i32) {
    %c0_i32 = arith.constant 0 : i32
    %c0_i32_0 = arith.constant 0 : i32
    %c0_i32_1 = arith.constant 0 : i32
    return %c0_i32, %c0_i32_0 : i32, i32
  }
  func.func @transform_6(%arg0: i32) -> (i32, i32) {
    %c0_i32 = arith.constant 0 : i32
    %c0_i32_0 = arith.constant 0 : i32
    return %arg0, %c0_i32 : i32, i32
  }
}

</mosaic_0001>

<bundles_post_ra>
// kernel: mul.9
= control target key start
LH: loop header
LB: loop body
LE: loop exit
PB: predicated region body
PF: predicated region fallthrough
CT: control target
= control target key end

     0   :  { %s34_s0 = inlined_call_operand.vmem [shape: f32[1,4], index: 0, kind: input, shape index: {}]   ;;  %s35_s1 = inlined_call_operand.vmem [shape: f32[1,4], index: 1, kind: input, shape index: {}]   ;;  %s36_s2 = inlined_call_operand.vmem [shape: f32[1,4], index: 2, kind: output, shape index: {}]  }
   0x1   :  { %v3_v0 = vld [vmem:[%s34_s0] sm:$0x1] }
   0x2   :  { %v4_v1 = vld [vmem:[%s35_s1] sm:$0x1] }
   0x3   :  { %v7_v2 = vmul.f32 %v4_v1, %v3_v0 }
   0x5   :  { %9 = vst [vmem:[%s36_s2] sm:$0x1] %v7_v2 }

// kernel: hybrid_agent_forward.1
= control target key start
LH: loop header
LB: loop body
LE: loop exit
PB: predicated region body
PF: predicated region fallthrough
CT: control target
= control target key end

     0   :  { %v278_v0 = vmov 0   ;;  %v279_v15 = vmov 683565275   ;;  %v280_v17 = vmov 2475754826   ;;  %s403_s0 = inlined_call_operand.vmem [shape: f32[8,4], index: 0, kind: input, shape index: {}]   ;;  %s404_s1 = inlined_call_operand.vmem [shape: f32[1,4], index: 1, kind: input, shape index: {}]   ;;  %s405_s3 = inlined_call_operand.vmem [shape: f32[1,32], index: 3, kind: input, shape index: {}]   ;;  %s406_s2 = inlined_call_operand.vmem [shape: f32[4,32], index: 2, kind: input, shape index: {}]   ;;  %s407_s4 = inlined_call_operand.vmem [shape: f32[4,32], index: 4, kind: input, shape index: {}]   ;;  %s408_s5 = inlined_call_operand.vmem [shape: f32[1,4], index: 5, kind: input, shape index: {}]   ;;  %s409_s6 = inlined_call_operand.vmem [shape: f32[8,4], index: 6, kind: output, shape index: {}]  }
   0x1   :  { %270 = vset.pattern.permute.xlu0 %v278_v0  ;;  %v28_v1 = vld [vmem:[%s403_s0] sm:$0xff]  ;;  %v281_v19 = vmov 2131351028   ;;  %v282_v21 = vmov 2102212464  }
   0x2   :  { %v275_v2 = vld [vmem:[%s404_s1] ss:$0 sm:$0xff]  ;;  %v283_v23 = vmov 920167782   ;;  %v284_v29 = vmov 1326507024  }
   0x3   :  { %v330_v3 = vadd.f32 %v275_v2, %v28_v1 }
   0x5   :  { %v36_v4 = vand.u32 2139095040, %v330_v3  ;;  %v33_v6 = vand.u32 2147483647, %v330_v3  ;;  %vm35_vm12 = vcmp.lt.s32.totalorder %v330_v3, 0 }
   0x7   :  { %v37_v5 = vshrl.u32 %v36_v4, 23  ;;  %v40_v9 = vand.u32 8388607, %v33_v6  ;;  %vm378_vm13 = vcmp.le.f32.partialorder %v33_v6, 0.7853982 }
   0x9   :  { %v257_v7 = vadd.s32 4294967169, %v37_v5  ;;  %v41_v12 = vor.u32 8388608, %v40_v9 }
   0xb   :  { %v43_v8 = vadd.s32 1, %v257_v7  ;;  %v339_v31 = vshll.u32 %v41_v12, 8 }
   0xd   :  { %vm44_vm0 = vcmp.gt.s32.totalorder %v43_v8, 0  ;;  %v82_v43 = vand.u32 65535, %v339_v31  ;;  %v83_v44 = vshrl.u32 %v339_v31, 16 }
   0xe   :  { %v45_v10 = vsel %vm44_vm0, %v43_v8, 0 }
   0xf   :  { %v47_v11 = vand.u32 31, %v45_v10  ;;  %v336_v13 = vshrl.u32 %v45_v10, 5 }
  0x11   :  { %v48_v14 = vsub.s32 32, %v47_v11  ;;  %v50_v16 = vshll.u32 %v279_v15, %v47_v11  ;;  %v53_v18 = vshll.u32 %v280_v17, %v47_v11  ;;  %v56_v20 = vshll.u32 %v281_v19, %v47_v11 }
  0x12   :  { %v59_v22 = vshll.u32 %v282_v21, %v47_v11  ;;  %v62_v24 = vshll.u32 %v283_v23, %v47_v11  ;;  %vm65_vm1 = vcmp.lt.s32.totalorder %v336_v13, 1  ;;  %vm68_vm2 = vcmp.lt.s32.totalorder %v336_v13, 4 }
  0x13   :  { %v51_v25 = vshrl.u32 %v280_v17, %v48_v14  ;;  %v54_v26 = vshrl.u32 %v281_v19, %v48_v14  ;;  %v57_v27 = vshrl.u32 %v282_v21, %v48_v14  ;;  %v60_v28 = vshrl.u32 %v283_v23, %v48_v14 }
  0x14   :  { %v63_v30 = vshrl.u32 %v284_v29, %v48_v14  ;;  %vm67_vm3 = vcmp.lt.s32.totalorder %v336_v13, 3  ;;  %vm66_vm4 = vcmp.lt.s32.totalorder %v336_v13, 2  ;;  %v49_v51 = vshrl.u32 %v279_v15, %v48_v14 }
  0x15   :  { %v52_v32 = vor.u32 %v51_v25, %v50_v16  ;;  %v55_v33 = vor.u32 %v54_v26, %v53_v18  ;;  %v58_v34 = vor.u32 %v57_v27, %v56_v20  ;;  %v61_v35 = vor.u32 %v60_v28, %v59_v22 }
  0x16   :  { %v64_v36 = vor.u32 %v63_v30, %v62_v24 }
  0x17   :  { %v73_v37 = vsel %vm65_vm1, %v52_v32, %v55_v33  ;;  %v77_v38 = vsel %vm65_vm1, %v55_v33, %v58_v34  ;;  %v74_v39 = vsel %vm68_vm2, %v61_v35, 920167782  ;;  %v69_v2 = vsel %vm65_vm1, %v49_v51, %v52_v32 }
  0x18   :  { %v78_v40 = vsel %vm68_vm2, %v64_v36, 1326507024  ;;  %v75_v41 = vsel %vm67_vm3, %v58_v34, %v74_v39  ;;  %v70_v7 = vsel %vm68_vm2, %v58_v34, 2102212464  ;;  %vm176_vm1 = vweird.f32 %v330_v3 }
  0x19   :  { %v79_v42 = vsel %vm67_vm3, %v61_v35, %v78_v40  ;;  %v76_v45 = vsel %vm66_vm4, %v73_v37, %v75_v41  ;;  %v71_v18 = vsel %vm67_vm3, %v55_v33, %v70_v7  ;;  %vm222_vm2 = vcmask 261120  }
  0x1a   :  { %v80_v46 = vsel %vm66_vm4, %v77_v38, %v79_v42  ;;  %v106_v49 = vand.u32 65535, %v76_v45  ;;  %v107_v50 = vshrl.u32 %v76_v45, 16  ;;  %v72_v24 = vsel %vm66_vm4, %v69_v2, %v71_v18 }
  0x1b   :  { %v84_v47 = vand.u32 65535, %v80_v46  ;;  %v85_v48 = vshrl.u32 %v80_v46, 16  ;;  %v126_v27 = vmul.u32 %v339_v31, %v72_v24  ;;  %v286_v18 = vmov 1  }
  0x1c   :  { %v108_v55 = vmul.u32 %v106_v49, %v82_v43  ;;  %v109_v56 = vmul.u32 %v107_v50, %v82_v43  ;;  %v110_v57 = vmul.u32 %v106_v49, %v83_v44  ;;  %v111_v61 = vmul.u32 %v107_v50, %v83_v44 }
  0x1d   :  { %v86_v52 = vmul.u32 %v84_v47, %v82_v43  ;;  %v87_v53 = vmul.u32 %v85_v48, %v82_v43  ;;  %v88_v54 = vmul.u32 %v84_v47, %v83_v44  ;;  %v89_v58 = vmul.u32 %v85_v48, %v83_v44 }
  0x1e   :  { %v112_v62 = vshll.u32 %v109_v56, 16  ;;  %v114_v63 = vshll.u32 %v110_v57, 16  ;;  %v113_v12 = vshrl.u32 %v109_v56, 16  ;;  %v115_v19 = vshrl.u32 %v110_v57, 16 }
  0x1f   :  { %v90_v59 = vshll.u32 %v87_v53, 16  ;;  %v92_v60 = vshll.u32 %v88_v54, 16  ;;  %v91_v8 = vshrl.u32 %v87_v53, 16  ;;  %v93_v15 = vshrl.u32 %v88_v54, 16 }
  0x20   :  { %vm116_vm6 = vc.u32 %v108_v55, %v112_v62  ;;  %v118_v5 = vadd.s32 %v112_v62, %v108_v55  ;;  %v285_v48 = vmov 2   ;;  %vm241_vm3 = vcmask 7168  }
  0x21   :  { %vm94_vm5 = vc.u32 %v86_v52, %v90_v59  ;;  %v96_v1 = vadd.s32 %v90_v59, %v86_v52  ;;  %v117_v10 = vsel %vm116_vm6, 1, %v278_v0  ;;  %272 = vset.pattern.permute.xlu1 %v285_v48  ;;  %vm243_vm4 = vcmask 15360  }
  0x22   :  { %v95_v4 = vsel %vm94_vm5, 1, %v278_v0  ;;  %v119_v14 = vadd.s32 %v117_v10, %v111_v61  ;;  %vm120_vm8 = vc.u32 %v118_v5, %v114_v63  ;;  %v122_v22 = vadd.s32 %v118_v5, %v114_v63 }
  0x23   :  { %v97_v9 = vadd.s32 %v95_v4, %v89_v58  ;;  %vm98_vm7 = vc.u32 %v96_v1, %v92_v60  ;;  %v121_v17 = vsel %vm120_vm8, 1, %v278_v0  ;;  %vm245_vm5 = vcmask 23552  }
  0x24   :  { %v99_v11 = vsel %vm98_vm7, 1, %v278_v0  ;;  %v123_v20 = vadd.s32 %v121_v17, %v119_v14  ;;  %vm251_vm6 = vcmask 31744  }
  0x25   :  { %v101_v16 = vadd.s32 %v99_v11, %v97_v9 }
  0x26   :  { %v124_v23 = vadd.s32 %v123_v20, %v113_v12 }
  0x27   :  { %v102_v21 = vadd.s32 %v101_v16, %v91_v8 }
  0x28   :  { %v125_v26 = vadd.s32 %v124_v23, %v115_v19  ;;  %v287_v19 = vmov 3  }
  0x29   :  { %v103_v25 = vadd.s32 %v102_v21, %v93_v15 }
  0x2a   :  { %v129_v28 = vadd.s32 1, %v125_v26 }
  0x2b   :  { %vm128_vm9 = vc.u32 %v103_v25, %v122_v22  ;;  %v127_v39 = vadd.s32 %v122_v22, %v103_v25  ;;  %v24_v22 = vld [vmem:[%s406_s2] sm:$0xf] }
  0x2c   :  { %v130_v29 = vsel %vm128_vm9, %v129_v28, %v125_v26  ;;  %v192_v23 = vperm.slane %v24_v22, 0  ;;  %v205_v24 = vperm.slane %v24_v22, 2  ;;  %v212_v25 = vperm.slane %v24_v22, 3 }
  0x2d   :  { %v131_v30 = vadd.s32 %v130_v29, %v126_v27 }
  0x2f   :  { %v132_v0 = vadd.s32 536870912, %v131_v30 }
  0x31   :  { %v133_v32 = vshrl.u32 %v132_v0, 30 }
  0x33   :  { %v134_v34 = vshll.u32 %v133_v32, 30  ;;  %v157_v54 = vsub.s32 4, %v133_v32 }
  0x35   :  { %v135_v33 = vsub.s32 %v131_v30, %v134_v34  ;;  %v158_v59 = vsel %vm35_vm12, %v157_v54, %v133_v32  ;;  %v276_v34 = vld [vmem:[%s405_s3] ss:$0 sm:$0xff] }
  0x36   :  { %v160_v62 = vsel %vm378_vm13, 0, %v158_v59 }
  0x37   :  { %vm136_vm10 = vcmp.lt.s32.totalorder %v135_v33, 0  ;;  %v137_v35 = vsub.s32 0, %v135_v33  ;;  %v177_v4 = vand.u32 3, %v160_v62 }
  0x39   :  { %v138_v36 = vsel %vm136_vm10, %v137_v35, %v135_v33  ;;  %vm182_vm14 = vcmp.eq.s32.totalorder %v177_v4, 2  ;;  %vm179_vm15 = vcmp.eq.s32.totalorder %v177_v4, 0  ;;  %vm178_vm0 = vcmp.lt.s32.totalorder %v177_v4, 2  ;;  %v26_v35 = vld [vmem:[%s407_s4] sm:$0xf] }
  0x3a   :  { %v139_v37 = vclz %v138_v36 }
  0x3c   :  { %v258_v38 = vadd.s32 4294967294, %v139_v37 }
  0x3e   :  { %vm259_vm11 = vcmp.lt.s32.totalorder %v258_v38, 0 }
  0x3f   :  { %v142_v13 = vsel %vm259_vm11, 0, %v258_v38  ;;  %v231_v38 = vperm.slane %v26_v35, 2 }
  0x40   :  { %v143_v40 = vsub.s32 32, %v142_v13  ;;  %v144_v41 = vshll.u32 %v135_v33, %v142_v13  ;;  %v147_v42 = vsub.s32 4294967266, %v142_v13 }
  0x42   :  { %v145_v43 = vshrl.u32 %v127_v39, %v143_v40  ;;  %v148_v31 = vadd.s32 127, %v147_v42  ;;  %v220_v39 = vperm.slane %v26_v35, 0 }
  0x44   :  { %v146_v44 = vor.u32 %v145_v43, %v144_v41  ;;  %v149_v45 = vshll.u32 %v148_v31, 23  ;;  %v226_v31 = vperm.slane %v26_v35, 1 }
  0x46   :  { %v150_v46 = vor.u32 4788187, %v149_v45  ;;  %v153_v47 = vcvt.s32.f32 %v146_v44 }
  0x48   :  { %v151_v49 = vand.u32 2147483647, %v150_v46  ;;  %v236_v46 = vperm.slane %v26_v35, 3 }
  0x4a   :  { %v154_v50 = vmul.f32 %v153_v47, %v151_v49 }
  0x4c   :  { %v155_v52 = vxor.u32 2147483648, %v154_v50 }
  0x4e   :  { %v156_v53 = vsel %vm35_vm12, %v155_v52, %v154_v50  ;;  %v277_v52 = vld [vmem:[%s408_s5] ss:$0 sm:$0xff] }
  0x4f   :  { %v159_v55 = vsel %vm378_vm13, %v330_v3, %v156_v53  ;;  %v198_v3 = vperm.slane %v24_v22, 1 }
  0x50   :  { %v161_v56 = vmul.f32 %v159_v55, %v159_v55 }
  0x52   :  { %v162_v57 = vmul.f32 -0.001358992, %v161_v56  ;;  %v169_v58 = vmul.f32 -0.00019511016, %v161_v56 }
  0x54   :  { %v163_v60 = vadd.f32 0.041655596, %v162_v57  ;;  %v170_v61 = vadd.f32 0.008332121, %v169_v58 }
  0x56   :  { %v164_v6 = vmul.f32 %v163_v60, %v161_v56  ;;  %v171_v63 = vmul.f32 %v170_v61, %v161_v56 }
  0x58   :  { %v165_v1 = vadd.f32 -0.4999988, %v164_v6  ;;  %v172_v2 = vadd.f32 -0.16666654, %v171_v63 }
  0x5a   :  { %v166_v5 = vmul.f32 %v165_v1, %v161_v56  ;;  %v173_v7 = vmul.f32 %v172_v2, %v161_v56 }
  0x5c   :  { %v167_v8 = vadd.f32 1.0, %v166_v5  ;;  %v174_v9 = vadd.f32 1.0, %v173_v7 }
  0x5e   :  { %v175_v10 = vmul.f32 %v174_v9, %v159_v55  ;;  %v183_v11 = vxor.u32 2147483648, %v167_v8 }
  0x60   :  { %v180_v12 = vxor.u32 2147483648, %v175_v10  ;;  %v184_v14 = vsel %vm182_vm14, %v183_v11, %v175_v10 }
  0x62   :  { %v181_v15 = vsel %vm179_vm15, %v167_v8, %v180_v12 }
  0x63   :  { %v185_v16 = vsel %vm178_vm0, %v181_v15, %v184_v14 }
  0x64   :  { %v186_v17 = vsel %vm176_vm1, nan, %v185_v16 }
  0x65   :  { %189 = vperm.xlu0 %270, %v186_v17   ;;  %202 = vperm.xlu1 %272, %v186_v17  }
  0x6d   :  { %271 = vset.pattern.permute.xlu0 %v286_v18  ;;  %273 = vset.pattern.permute.xlu1 %v287_v19 }
  0x6e   :  { %195 = vperm.xlu0 %271, %v186_v17   ;;  %209 = vperm.xlu1 %273, %v186_v17  }
  0x76   :  { %274 = vset.pattern.permute.xlu0 %v287_v19 }
  0xd7   :  { %v190_v20 = vpop.permute.xlu0 %189  ;;  %v203_v21 = vpop.permute.xlu1 %202 }
  0xd8   :  { %v193_v28 = vmul.f32 %v192_v23, %v190_v20  ;;  %v206_v30 = vmul.f32 %v205_v24, %v203_v21 }
  0xe0   :  { %v196_v26 = vpop.permute.xlu0 %195  ;;  %v210_v27 = vpop.permute.xlu1 %209 }
  0xe1   :  { %v199_v29 = vmul.f32 %v198_v3, %v196_v26  ;;  %v213_v32 = vmul.f32 %v212_v25, %v210_v27 }
  0xe3   :  { %v200_v0 = vadd.f32 %v199_v29, %v193_v28 }
  0xe5   :  { %v207_v33 = vadd.f32 %v206_v30, %v200_v0 }
  0xe7   :  { %v214_v36 = vadd.f32 %v213_v32, %v207_v33 }
  0xe9   :  { %v218_v37 = vadd.f32 %v276_v34, %v214_v36 }
  0xeb   :  { %v219_v13 = vmax.f32 %v218_v37, 0.0 }
  0xed   :  { %v232_v40 = vmul.f32 %v231_v38, %v219_v13  ;;  %v221_v41 = vmul.f32 %v220_v39, %v219_v13  ;;  %v227_v44 = vmul.f32 %v226_v31, %v219_v13  ;;  %v237_v47 = vmul.f32 %v236_v46, %v219_v13 }
  0xef   :  { %v233_v42 = vsel %vm222_vm2, %v232_v40, 0.0  ;;  %v223_v43 = vsel %vm222_vm2, %v221_v41, 0.0  ;;  %v228_v45 = vsel %vm222_vm2, %v227_v44, 0.0  ;;  %v238_v48 = vsel %vm222_vm2, %v237_v47, 0.0 }
  0xf0   :  { %234 = vadd.xlane.f32.xlu1 %v233_v42  ;;  %224 = vadd.xlane.f32.xlu2 %v223_v43 }
  0xf8   :  { %229 = vadd.xlane.f32.xlu2 %v228_v45 }
 0x100   :  { %239 = vadd.xlane.f32.xlu2 %v238_v48 }
 0x163   :  { %v225_v49 = vpop.xlane.xlu2 %224  ;;  %v235_v53 = vpop.xlane.xlu1 %234 }
 0x16b   :  { %v230_v50 = vpop.xlane.xlu2 %229 }
 0x16c   :  { %v242_v51 = vsel %vm241_vm3, %v225_v49, %v230_v50 }
 0x16d   :  { %v244_v54 = vsel %vm243_vm4, %v242_v51, %v235_v53 }
 0x173   :  { %v240_v55 = vpop.xlane.xlu2 %239 }
 0x174   :  { %v246_v56 = vsel %vm245_vm5, %v244_v54, %v240_v55 }
 0x175   :  { %v250_v57 = vadd.f32 %v277_v52, %v246_v56 }
 0x177   :  { %252 = vst.msk [vmem:[%s409_s6] sm:$0xff] %vm251_vm6, %v250_v57 }

</bundles_post_ra>
